<compile_context>
chip_gen: v5e
topology: v5e:2x2
jax: 0.10.0
libtpu: 0.0.40
codegen_flags: <defaults>
</compile_context>

<pallas_src>
import math

import jax
import jax.numpy as jnp
from jax.experimental import pallas as pl
from jax.experimental.pallas import tpu as pltpu


def _round_up(x, m):
    return ((x + m - 1) // m) * m


def _vmem_capacity_bytes():
    """Per-core VMEM capacity; fall back to a conservative 64 MiB (v7x) if unknown."""
    try:
        return int(pltpu.get_tpu_info().vmem_capacity_bytes)
    except Exception:
        return 64 << 20


def _default_ff_block(d_ff, d_model, compute_bytes, budget_bytes):
    """Largest divisor of d_ff (preferring 256-multiples, then 128-multiples) whose
    W1/W2 slice (d_model x ff_block) stays under ~budget_bytes."""
    if d_ff % 128 != 0:
        return d_ff  # fall back to one full block (still correct, just bigger)
    max_block = max(128, (budget_bytes // max(1, d_model * compute_bytes)) // 128 * 128)
    if d_ff <= max_block:
        return d_ff
    for align in (256, 128):  # 256-aligned slices fill the 256x256 MXU on v6e/v7x
        cand = (max_block // align) * align
        while cand >= align:
            if d_ff % cand == 0:
                return cand
            cand -= align
    return d_ff


def _vmem_need(tile_rows, ff_block, ff_tiles, d_model, xbytes, obytes, cbytes, wbufs):
    """Rough per-step VMEM footprint (double-buffered x/out tiles, weight slices,
    f32 accumulator, f32+bf16 hidden activations, in-kernel bf16 cast of x)."""
    need = 2 * tile_rows * d_model * xbytes                 # x tiles (double-buffered)
    need += 2 * tile_rows * d_model * obytes                # out tiles
    need += wbufs * 2 * d_model * ff_block * cbytes         # W1 + W2 slices
    need += wbufs * ff_block * 4 + d_model * 4              # b1 slices + b2
    if ff_tiles > 1:
        need += tile_rows * d_model * 4                     # f32 accumulator scratch
    need += tile_rows * d_model * cbytes                    # in-kernel bf16 cast of x
    need += tile_rows * ff_block * (4 + cbytes)             # h in f32 + bf16 copy
    return need


def _ffn_kernel_fused(x_ref, w1_ref, b1_ref, w2_ref, b2_ref, o_ref):
    """d_ff fits in one block: compute and store directly (no scratch, no pl.when)."""
    xc = x_ref[...].astype(w1_ref.dtype)          # in-kernel cast; hides under the MXU
    h = jnp.dot(xc, w1_ref[...], preferred_element_type=jnp.float32)
    h = jnp.maximum(h + b1_ref[...], 0.0)         # bias + ReLU in f32 (VPU)
    y = jnp.dot(h.astype(w2_ref.dtype), w2_ref[...],
                preferred_element_type=jnp.float32)
    o_ref[...] = (y + b2_ref[...]).astype(o_ref.dtype)


def _ffn_kernel_streamed(x_ref, w1_ref, b1_ref, w2_ref, b2_ref, o_ref, acc_ref):
    """d_ff streamed over the inner grid axis; fc2 partials accumulated in f32."""
    k = pl.program_id(1)

    @pl.when(k == 0)
    def _init():
        # Start the accumulator from the fc2 bias (broadcast over rows), in f32.
        acc_ref[...] = jnp.broadcast_to(b2_ref[...], acc_ref.shape).astype(jnp.float32)

    xc = x_ref[...].astype(w1_ref.dtype)          # in-kernel cast; hides under the MXU
    h = jnp.dot(xc, w1_ref[...], preferred_element_type=jnp.float32)
    h = jnp.maximum(h + b1_ref[...], 0.0)
    acc_ref[...] += jnp.dot(h.astype(w2_ref.dtype), w2_ref[...],
                            preferred_element_type=jnp.float32)

    @pl.when(k == pl.num_programs(1) - 1)
    def _finalize():
        o_ref[...] = acc_ref[...].astype(o_ref.dtype)


def position_wise_feed_forward(x, w1, b1, w2, b2, *,
                               tile_rows=None,
                               ff_block=None,
                               weight_buffers=2,
                               compute_dtype=jnp.bfloat16,
                               interpret=False):
    """x: (..., d_model); w1: (d_model, d_ff); w2: (d_ff, d_model). Returns x.shape.

    weight_buffers: pipeline depth for the streamed W1/W2/b1 slices (set 3 on v6e if
    profiling shows exposed weight DMA with small, clamped row tiles).
    """
    orig_shape = x.shape
    d_model = x.shape[-1]
    d_ff = w1.shape[1]
    assert w1.shape == (d_model, d_ff)
    assert b1.shape == (d_ff,)
    assert w2.shape == (d_ff, d_model)
    assert b2.shape == (d_model,)

    out_dtype = x.dtype
    cdt = jnp.dtype(x.dtype if compute_dtype is None else compute_dtype)
    cbytes = cdt.itemsize
    xbytes = jnp.dtype(x.dtype).itemsize
    obytes = jnp.dtype(out_dtype).itemsize

    rows = math.prod(orig_shape[:-1]) if orig_shape[:-1] else 1

    # ---- VMEM budget from the actual part (v7x: 64 MiB/TC; v5e/v6e: 128 MiB).
    cap = _vmem_capacity_bytes()
    usable = max(int(cap * 0.8) - (4 << 20), 16 << 20)

    # ---- d_ff tiling: ~16 MiB weight slices, 256-aligned where possible.
    ff_block_user = ff_block is not None
    if not ff_block_user:
        ff_block = _default_ff_block(d_ff, d_model, cbytes,
                                     budget_bytes=min(16 << 20, usable // 4))
    ff_block = int(ff_block)
    if d_ff % ff_block != 0 or (ff_block != d_ff and ff_block % 128 != 0):
        raise ValueError("ff_block must divide d_ff and be a multiple of 128 "
                         "(or equal d_ff)")

    # ---- row tiling: big when weights are streamed (hide per-row-tile W1/W2 refetch
    #      behind the matmuls on v6e/v7x), moderate otherwise; clamped to the problem.
    streamed_guess = ff_block < d_ff
    if tile_rows is None:
        tile_rows = 1024 if streamed_guess else 512
    tile_rows = max(8, min(int(tile_rows), _round_up(rows, 8)))
    tile_rows = _round_up(tile_rows, 8)
    # Balance rows across row tiles: less padding waste, both v7x TCs stay busy.
    n_row_tiles = max(1, -(-rows // tile_rows))
    tile_rows = _round_up(-(-rows // n_row_tiles), 8)

    # ---- shrink until the footprint fits the physical VMEM budget.
    while True:
        ff_tiles = d_ff // ff_block
        wbufs = 1 if ff_tiles == 1 else max(2, int(weight_buffers))
        need = _vmem_need(tile_rows, ff_block, ff_tiles, d_model,
                          xbytes, obytes, cbytes, wbufs)
        if need <= usable:
            break
        if tile_rows > 8:
            tile_rows = max(8, _round_up(tile_rows // 2, 8))
        elif (not ff_block_user and ff_block > 128 and ff_block % 256 == 0
              and d_ff % (ff_block // 2) == 0):
            ff_block //= 2
        else:
            break

    ff_tiles = d_ff // ff_block
    streamed = ff_tiles > 1
    rows_padded = _round_up(rows, tile_rows)
    row_tiles = rows_padded // tile_rows
    grid = (row_tiles, ff_tiles)

    # ---- operands. x keeps its dtype (cast happens inside the kernel); weights are
    #      pre-cast once to bf16 since they get re-streamed once per row tile.
    x2d = x.reshape(rows, d_model)
    if rows_padded != rows:
        # Padded rows compute garbage (relu(b1)@W2+b2) but are sliced off below.
        x2d = jnp.pad(x2d, ((0, rows_padded - rows), (0, 0)))
    w1c = w1.astype(cdt)
    w2c = w2.astype(cdt)
    b1_2d = b1.reshape(1, d_ff).astype(jnp.float32)
    b2_2d = b2.reshape(1, d_model).astype(jnp.float32)

    vmem_need = need
    vmem_limit = int(min(max(2 * vmem_need + (8 << 20), 48 << 20), int(cap * 0.85)))

    weight_bytes = 2 * d_model * d_ff * cbytes
    cost = pl.CostEstimate(
        flops=int(4.0 * rows_padded * d_model * d_ff),
        transcendentals=0,
        bytes_accessed=int(rows_padded * d_model * (xbytes + obytes)
                           + weight_bytes * (row_tiles if streamed else 1)
                           + (d_ff + d_model) * 4),
    )

    kernel = _ffn_kernel_streamed if streamed else _ffn_kernel_fused
    scratch = [pltpu.VMEM((tile_rows, d_model), jnp.float32)] if streamed else []

    def build(use_pipeline_mode):
        def spec(shape, imap, mode=None):
            if mode is None or not use_pipeline_mode:
                return pl.BlockSpec(shape, imap)
            return pl.BlockSpec(shape, imap, pipeline_mode=mode)

        # Grid-invariant operands: single buffer (saves VMEM). Streamed W1/W2/b1
        # keep >=2 buffers so the next slice prefetches behind the current matmuls.
        w_mode = pl.Buffered(max(2, int(weight_buffers))) if streamed else pl.Buffered(1)
        inv_mode = pl.Buffered(1)

        in_specs = [
            pl.BlockSpec((tile_rows, d_model), lambda i, k: (i, 0)),     # x tile
            spec((d_model, ff_block), lambda i, k: (0, k), w_mode),      # W1 slice
            spec((1, ff_block), lambda i, k: (0, k), w_mode),            # b1 slice
            spec((ff_block, d_model), lambda i, k: (k, 0), w_mode),      # W2 slice
            spec((1, d_model), lambda i, k: (0, 0), inv_mode),           # b2 (invariant)
        ]
        out_specs = pl.BlockSpec((tile_rows, d_model), lambda i, k: (i, 0))

        return pl.pallas_call(
            kernel,
            out_shape=jax.ShapeDtypeStruct((rows_padded, d_model), out_dtype),
            grid_spec=pltpu.PrefetchScalarGridSpec(
                num_scalar_prefetch=0,
                grid=grid,
                in_specs=in_specs,
                out_specs=out_specs,
                scratch_shapes=scratch,
            ),
            compiler_params=pltpu.CompilerParams(
                dimension_semantics=("parallel", "arbitrary"),
                vmem_limit_bytes=vmem_limit,
            ),
            cost_estimate=cost,
            interpret=interpret,
        )

    try:
        out2d = build(True)(x2d, w1c, b1_2d, w2c, b2_2d)
    except Exception:
        # Safety net: if this jax/libtpu combo rejects pipeline_mode=pl.Buffered(...),
        # fall back to the default double-buffered pipeline (correctness identical).
        out2d = build(False)(x2d, w1c, b1_2d, w2c, b2_2d)

    if rows_padded != rows:
        out2d = out2d[:rows]
    return out2d.reshape(orig_shape)


def init_linear_params(key, in_features, out_features, dtype=jnp.float32):
    """Mimic torch.nn.Linear default init: U(-1/sqrt(in), 1/sqrt(in)).

    Weight is stored as (in, out) — PyTorch's W.T — so the kernel computes x @ W + b.
    """
    kw, kb = jax.random.split(key)
    bound = 1.0 / math.sqrt(in_features)
    w = jax.random.uniform(kw, (in_features, out_features), dtype,
                           minval=-bound, maxval=bound)
    b = jax.random.uniform(kb, (out_features,), dtype,
                           minval=-bound, maxval=bound)
    return w, b


if __name__ == "__main__":
    key = jax.random.PRNGKey(0)
    k_x, k_fc1, k_fc2 = jax.random.split(key, 3)

    # Small, 128-lane-aligned shapes; seq=50 exercises row padding/balancing.
    batch, seq, d_model, d_ff = 2, 50, 128, 256

    x = jax.random.normal(k_x, (batch, seq, d_model), dtype=jnp.float32)
    w1, b1 = init_linear_params(k_fc1, d_model, d_ff)
    w2, b2 = init_linear_params(k_fc2, d_ff, d_model)

    # Reference with matching numerics (bf16 matmul operands, f32 accumulation).
    xb = x.astype(jnp.bfloat16)
    h_ref = jnp.dot(xb, w1.astype(jnp.bfloat16),
                    preferred_element_type=jnp.float32) + b1
    h_ref = jnp.maximum(h_ref, 0.0).astype(jnp.bfloat16)
    ref_bf16 = jnp.dot(h_ref, w2.astype(jnp.bfloat16),
                       preferred_element_type=jnp.float32) + b2
    # Loose sanity reference: pure-f32 math of the PyTorch module.
    ref_f32 = jnp.maximum(x @ w1 + b1, 0.0) @ w2 + b2

    # Path 1: d_ff resident in one block -> fused kernel (no scratch accumulator).
    out_fused = jax.block_until_ready(position_wise_feed_forward(x, w1, b1, w2, b2))
    # Path 2: d_ff streamed over the inner grid axis -> accumulator kernel.
    out_streamed = jax.block_until_ready(
        position_wise_feed_forward(x, w1, b1, w2, b2, ff_block=128))

    for out in (out_fused, out_streamed):
        assert out.shape == (batch, seq, d_model)
        assert not bool(jnp.any(jnp.isnan(out)))
        assert jnp.allclose(out, ref_bf16, atol=2e-3, rtol=2e-3), \
            "mismatch vs bf16-matched reference"
        assert jnp.allclose(out, ref_f32, atol=1e-1, rtol=1e-1), \
            "mismatch vs f32 reference"

    print("KERNEL_OK")
</pallas_src>

<mosaic_0001>
module attributes {stable_mosaic.version = 11 : i64} {
  func.func @_ffn_kernel_fused(%arg0: i32, %arg1: i32, %arg2: memref<104x128xf32, #tpu.memory_space<vmem>>, %arg3: memref<128x256xbf16, #tpu.memory_space<vmem>>, %arg4: memref<1x256xf32, #tpu.memory_space<vmem>>, %arg5: memref<256x128xbf16, #tpu.memory_space<vmem>>, %arg6: memref<1x128xf32, #tpu.memory_space<vmem>>, %arg7: memref<104x128xf32, #tpu.memory_space<vmem>>) attributes {dimension_semantics = [#tpu.dimension_semantics<parallel>, #tpu.dimension_semantics<arbitrary>], iteration_bounds = array<i64: 1, 1>, scalar_prefetch = 0 : i64, scratch_operands = 0 : i64, tpu.core_type = #tpu.core_type<tc>, window_params = [{transform_indices = @transform_0, window_bounds = array<i64: 104, 128>}, {pipeline_mode = #tpu.pipeline_mode<synchronous>, transform_indices = @transform_1, window_bounds = array<i64: 128, 256>}, {pipeline_mode = #tpu.pipeline_mode<synchronous>, transform_indices = @transform_2, window_bounds = array<i64: 1, 256>}, {pipeline_mode = #tpu.pipeline_mode<synchronous>, transform_indices = @transform_3, window_bounds = array<i64: 256, 128>}, {pipeline_mode = #tpu.pipeline_mode<synchronous>, transform_indices = @transform_4, window_bounds = array<i64: 1, 128>}, {transform_indices = @transform_5, window_bounds = array<i64: 104, 128>}]} {
    %c0 = arith.constant 0 : index
    %c0_0 = arith.constant 0 : index
    %0 = vector.load %arg2[%c0, %c0_0] : memref<104x128xf32, #tpu.memory_space<vmem>>, vector<104x128xf32>
    %1 = arith.truncf %0 : vector<104x128xf32> to vector<104x128xbf16>
    %c0_1 = arith.constant 0 : index
    %c0_2 = arith.constant 0 : index
    %2 = vector.load %arg3[%c0_1, %c0_2] : memref<128x256xbf16, #tpu.memory_space<vmem>>, vector<128x256xbf16>
    %cst = arith.constant dense<0.000000e+00> : vector<104x256xf32>
    %3 = tpu.matmul %1, %2, %cst {dimension_numbers = #tpu.dot_dimension_numbers<[1], [0], [0], [1], [0, 0, 1, 1], [], []>} : vector<104x128xbf16>, vector<128x256xbf16>, vector<104x256xf32> -> vector<104x256xf32>
    %c0_3 = arith.constant 0 : index
    %c0_4 = arith.constant 0 : index
    %4 = vector.load %arg4[%c0_3, %c0_4] : memref<1x256xf32, #tpu.memory_space<vmem>>, vector<1x256xf32>
    %5 = vector.broadcast %4 : vector<1x256xf32> to vector<104x256xf32>
    %6 = arith.addf %3, %5 : vector<104x256xf32>
    %cst_5 = arith.constant 0.000000e+00 : f32
    %7 = vector.broadcast %cst_5 : f32 to vector<104x256xf32>
    %8 = arith.maximumf %6, %7 : vector<104x256xf32>
    %9 = arith.truncf %8 : vector<104x256xf32> to vector<104x256xbf16>
    %c0_6 = arith.constant 0 : index
    %c0_7 = arith.constant 0 : index
    %10 = vector.load %arg5[%c0_6, %c0_7] : memref<256x128xbf16, #tpu.memory_space<vmem>>, vector<256x128xbf16>
    %cst_8 = arith.constant dense<0.000000e+00> : vector<104x128xf32>
    %11 = tpu.matmul %9, %10, %cst_8 {dimension_numbers = #tpu.dot_dimension_numbers<[1], [0], [0], [1], [0, 0, 1, 1], [], []>} : vector<104x256xbf16>, vector<256x128xbf16>, vector<104x128xf32> -> vector<104x128xf32>
    %c0_9 = arith.constant 0 : index
    %c0_10 = arith.constant 0 : index
    %12 = vector.load %arg6[%c0_9, %c0_10] : memref<1x128xf32, #tpu.memory_space<vmem>>, vector<1x128xf32>
    %13 = vector.broadcast %12 : vector<1x128xf32> to vector<104x128xf32>
    %14 = arith.addf %11, %13 : vector<104x128xf32>
    %c0_11 = arith.constant 0 : index
    %c0_12 = arith.constant 0 : index
    %15 = vector.load %arg7[%c0_11, %c0_12] : memref<104x128xf32, #tpu.memory_space<vmem>>, vector<104x128xf32>
    tpu.vector_store %arg7[%c0_11, %c0_12], %14 {strides = array<i32>} : memref<104x128xf32, #tpu.memory_space<vmem>>, vector<104x128xf32>,
    return
  }
  func.func @transform_0(%arg0: i32, %arg1: i32) -> (i32, i32) {
    %c0_i32 = arith.constant 0 : i32
    %c0_i32_0 = arith.constant 0 : i32
    return %arg0, %c0_i32 : i32, i32
  }
  func.func @transform_1(%arg0: i32, %arg1: i32) -> (i32, i32) {
    %c0_i32 = arith.constant 0 : i32
    %c0_i32_0 = arith.constant 0 : i32
    return %c0_i32, %arg1 : i32, i32
  }
  func.func @transform_2(%arg0: i32, %arg1: i32) -> (i32, i32) {
    %c0_i32 = arith.constant 0 : i32
    %c0_i32_0 = arith.constant 0 : i32
    return %c0_i32, %arg1 : i32, i32
  }
  func.func @transform_3(%arg0: i32, %arg1: i32) -> (i32, i32) {
    %c0_i32 = arith.constant 0 : i32
    %c0_i32_0 = arith.constant 0 : i32
    return %arg1, %c0_i32 : i32, i32
  }
  func.func @transform_4(%arg0: i32, %arg1: i32) -> (i32, i32) {
    %c0_i32 = arith.constant 0 : i32
    %c0_i32_0 = arith.constant 0 : i32
    %c0_i32_1 = arith.constant 0 : i32
    return %c0_i32, %c0_i32_0 : i32, i32
  }
  func.func @transform_5(%arg0: i32, %arg1: i32) -> (i32, i32) {
    %c0_i32 = arith.constant 0 : i32
    %c0_i32_0 = arith.constant 0 : i32
    return %arg0, %c0_i32 : i32, i32
  }
}

module attributes {stable_mosaic.version = 11 : i64} {
  func.func @_ffn_kernel_fused(%arg0: i32, %arg1: i32, %arg2: memref<104x128xf32, #tpu.memory_space<vmem>>, %arg3: memref<128x256xbf16, #tpu.memory_space<vmem>>, %arg4: memref<1x256xf32, #tpu.memory_space<vmem>>, %arg5: memref<256x128xbf16, #tpu.memory_space<vmem>>, %arg6: memref<1x128xf32, #tpu.memory_space<vmem>>, %arg7: memref<104x128xf32, #tpu.memory_space<vmem>>) attributes {dimension_semantics = [#tpu.dimension_semantics<parallel>, #tpu.dimension_semantics<arbitrary>], iteration_bounds = array<i64: 1, 1>, scalar_prefetch = 0 : i64, scratch_operands = 0 : i64, tpu.core_type = #tpu.core_type<tc>, window_params = [{transform_indices = @transform_0, window_bounds = array<i64: 104, 128>}, {transform_indices = @transform_1, window_bounds = array<i64: 128, 256>}, {transform_indices = @transform_2, window_bounds = array<i64: 1, 256>}, {transform_indices = @transform_3, window_bounds = array<i64: 256, 128>}, {pipeline_mode = #tpu.pipeline_mode<synchronous>, transform_indices = @transform_4, window_bounds = array<i64: 1, 128>}, {transform_indices = @transform_5, window_bounds = array<i64: 104, 128>}]} {
    %c0 = arith.constant 0 : index
    %c0_0 = arith.constant 0 : index
    %0 = vector.load %arg2[%c0, %c0_0] : memref<104x128xf32, #tpu.memory_space<vmem>>, vector<104x128xf32>
    %1 = arith.truncf %0 : vector<104x128xf32> to vector<104x128xbf16>
    %c0_1 = arith.constant 0 : index
    %c0_2 = arith.constant 0 : index
    %2 = vector.load %arg3[%c0_1, %c0_2] : memref<128x256xbf16, #tpu.memory_space<vmem>>, vector<128x256xbf16>
    %cst = arith.constant dense<0.000000e+00> : vector<104x256xf32>
    %3 = tpu.matmul %1, %2, %cst {dimension_numbers = #tpu.dot_dimension_numbers<[1], [0], [0], [1], [0, 0, 1, 1], [], []>} : vector<104x128xbf16>, vector<128x256xbf16>, vector<104x256xf32> -> vector<104x256xf32>
    %c0_3 = arith.constant 0 : index
    %c0_4 = arith.constant 0 : index
    %4 = vector.load %arg4[%c0_3, %c0_4] : memref<1x256xf32, #tpu.memory_space<vmem>>, vector<1x256xf32>
    %5 = vector.broadcast %4 : vector<1x256xf32> to vector<104x256xf32>
    %6 = arith.addf %3, %5 : vector<104x256xf32>
    %cst_5 = arith.constant 0.000000e+00 : f32
    %7 = vector.broadcast %cst_5 : f32 to vector<104x256xf32>
    %8 = arith.maximumf %6, %7 : vector<104x256xf32>
    %9 = arith.truncf %8 : vector<104x256xf32> to vector<104x256xbf16>
    %c0_6 = arith.constant 0 : index
    %c0_7 = arith.constant 0 : index
    %10 = vector.load %arg5[%c0_6, %c0_7] : memref<256x128xbf16, #tpu.memory_space<vmem>>, vector<256x128xbf16>
    %cst_8 = arith.constant dense<0.000000e+00> : vector<104x128xf32>
    %11 = tpu.matmul %9, %10, %cst_8 {dimension_numbers = #tpu.dot_dimension_numbers<[1], [0], [0], [1], [0, 0, 1, 1], [], []>} : vector<104x256xbf16>, vector<256x128xbf16>, vector<104x128xf32> -> vector<104x128xf32>
    %c0_9 = arith.constant 0 : index
    %c0_10 = arith.constant 0 : index
    %12 = vector.load %arg6[%c0_9, %c0_10] : memref<1x128xf32, #tpu.memory_space<vmem>>, vector<1x128xf32>
    %13 = vector.broadcast %12 : vector<1x128xf32> to vector<104x128xf32>
    %14 = arith.addf %11, %13 : vector<104x128xf32>
    %c0_11 = arith.constant 0 : index
    %c0_12 = arith.constant 0 : index
    %15 = vector.load %arg7[%c0_11, %c0_12] : memref<104x128xf32, #tpu.memory_space<vmem>>, vector<104x128xf32>
    tpu.vector_store %arg7[%c0_11, %c0_12], %14 {strides = array<i32>} : memref<104x128xf32, #tpu.memory_space<vmem>>, vector<104x128xf32>,
    return
  }
  func.func @transform_0(%arg0: i32, %arg1: i32) -> (i32, i32) {
    %c0_i32 = arith.constant 0 : i32
    %c0_i32_0 = arith.constant 0 : i32
    return %arg0, %c0_i32 : i32, i32
  }
  func.func @transform_1(%arg0: i32, %arg1: i32) -> (i32, i32) {
    %c0_i32 = arith.constant 0 : i32
    %c0_i32_0 = arith.constant 0 : i32
    return %c0_i32, %arg1 : i32, i32
  }
  func.func @transform_2(%arg0: i32, %arg1: i32) -> (i32, i32) {
    %c0_i32 = arith.constant 0 : i32
    %c0_i32_0 = arith.constant 0 : i32
    return %c0_i32, %arg1 : i32, i32
  }
  func.func @transform_3(%arg0: i32, %arg1: i32) -> (i32, i32) {
    %c0_i32 = arith.constant 0 : i32
    %c0_i32_0 = arith.constant 0 : i32
    return %arg1, %c0_i32 : i32, i32
  }
  func.func @transform_4(%arg0: i32, %arg1: i32) -> (i32, i32) {
    %c0_i32 = arith.constant 0 : i32
    %c0_i32_0 = arith.constant 0 : i32
    %c0_i32_1 = arith.constant 0 : i32
    return %c0_i32, %c0_i32_0 : i32, i32
  }
  func.func @transform_5(%arg0: i32, %arg1: i32) -> (i32, i32) {
    %c0_i32 = arith.constant 0 : i32
    %c0_i32_0 = arith.constant 0 : i32
    return %arg0, %c0_i32 : i32, i32
  }
}

</mosaic_0001>

<bundles_post_ra>
// kernel: tpu_custom_call.1
= control target key start
LH: loop header
LB: loop body
LE: loop exit
PB: predicated region body
PF: predicated region fallthrough
CT: control target
= control target key end

     0   :  { %10 = vsyncpa [#allocation3], 0  ;;  %s991_s0 = inlined_call_operand.hbm [shape: f32[104,128], index: 0, kind: input, shape index: {}]   ;;  %s992_s1 = inlined_call_operand.hbm [shape: bf16[128,256], index: 1, kind: input, shape index: {}]   ;;  %s993_s2 = inlined_call_operand.hbm [shape: f32[1,256], index: 2, kind: input, shape index: {}]   ;;  %s994_s3 = inlined_call_operand.hbm [shape: bf16[256,128], index: 3, kind: input, shape index: {}]   ;;  %s995_s4 = inlined_call_operand.vmem [shape: f32[1,128], index: 4, kind: input, shape index: {}]   ;;  %s996_s5 = inlined_call_operand.hbm [shape: f32[104,128], index: 5, kind: output, shape index: {}]  }
   0x1   :  { %11 = vsyncpa [#allocation6], 0 }
   0x2   :  { %12 = vsyncpa [#allocation9], 0 }
   0x3   :  { %13 = vsyncpa [#allocation4], 0  ;;  %s31_s20 = sshll.u32 %s992_s1, 4  ;;  %s880_s21 = smov [#allocation5]   ;;  %s32_s20 = int_to_ptr.hbm [resolvable:$true] %s31_s20 }
   0x4   :  { %s33_s22 = sshll.u32 %s880_s21, 4  ;;  %s18_s25 = sshll.u32 %s991_s0, 4  ;;  %s34_s22 = int_to_ptr.vmem [resolvable:$true] %s33_s22  ;;  %s19_s25 = int_to_ptr.hbm [resolvable:$true] %s18_s25 }
   0x5   :  { %s881_s26 = smov 128   ;;  %s882_s27 = smov 8  }
   0x6   :  { %39 = dma.hbm_to_vmem [thread:$0]  %s32_s20, 2048, %s34_s22, [#allocation6], %s881_s26, %s881_s26, %s882_s27  }
   0x7   :  { %s883_s28 = smov [#allocation2]   ;;  %s45_s1 = sshll.u32 %s993_s2, 4  ;;  %s46_s1 = int_to_ptr.hbm [resolvable:$true] %s45_s1 }
   0x8   :  { %s20_s29 = sshll.u32 %s883_s28, 4  ;;  %s55_s8 = sshll.u32 %s994_s3, 4  ;;  %s21_s29 = int_to_ptr.vmem [resolvable:$true] %s20_s29  ;;  %s56_s8 = int_to_ptr.hbm [resolvable:$true] %s55_s8 }
   0x9   :  { %26 = dma.hbm_to_vmem [thread:$0]  %s19_s25, 1664, %s21_s29, [#allocation3], %s881_s26, %s881_s26, %s882_s27  }
   0xa   :  { %s884_s9 = smov [#allocation7]   ;;  %s885_s11 = smov [#allocation8]  }
   0xb   :  { %s47_s10 = sshll.u32 %s884_s9, 4  ;;  %s57_s12 = sshll.u32 %s885_s11, 4  ;;  %s48_s10 = int_to_ptr.vmem [resolvable:$true] %s47_s10  ;;  %s58_s12 = int_to_ptr.vmem [resolvable:$true] %s57_s12 }
   0xc   :  { %50 = dma.hbm_to_vmem [thread:$0]  %s46_s1, 32, %s48_s10, [#allocation6]  }
   0xd   :  { %s886_s13 = smov 64   ;;  %s887_s2 = smov 4  }
   0xe   :  { %63 = dma.hbm_to_vmem [thread:$0]  %s56_s8, 2048, %s58_s12, [#allocation9], %s886_s13, %s886_s13, %s887_s2  }
   0xf   :  { %872 = dma.done.wait [#allocation3], 1664  }
  0x10   :  { %873 = vsyncadd [#allocation3], 4294965632 }
  0x11   :  { %874 = dma.done.wait [#allocation6], 2080  }
  0x12   :  { %875 = vsyncadd [#allocation6], 4294965216 }
  0x13   :  { %876 = dma.done.wait [#allocation9], 2048  }
  0x14   :  { %877 = vsyncadd [#allocation9], 4294965248  ;;  %v640_v0 = vld [vmem:[#allocation5 + $0x70] sm:$0xf]  ;;  %v725_v1 = vld [vmem:[#allocation5 + $0x74] sm:$0xf0] }
  0x15   :  { %v724_v2 = vld [vmem:[#allocation5 + $0x74] sm:$0xf]  ;;  %v641_v3 = vor.u32 %v725_v1, %v640_v0  ;;  %v642_v4 = vld [vmem:[#allocation5 + $0x78] sm:$0xf0]  ;;  %v632_v5 = vld [vmem:[#allocation5 + $0x60] sm:$0xf] }
  0x16   :  { %v723_v6 = vld [vmem:[#allocation5 + $0x64] sm:$0xf0]  ;;  %v645_v7 = vor.u32 %v724_v2, %v642_v4  ;;  %v722_v8 = vld [vmem:[#allocation5 + $0x64] sm:$0xf]  ;;  %v634_v9 = vld [vmem:[#allocation5 + $0x68] sm:$0xf0] }
  0x17   :  { %204 = vmatpush.bf16.msra.mxu0 %v641_v3  ;;  %v633_v10 = vor.u32 %v723_v6, %v632_v5  ;;  %v637_v11 = vor.u32 %v722_v8, %v634_v9  ;;  %v624_v12 = vld [vmem:[#allocation5 + $0x50] sm:$0xf]  ;;  %v721_v13 = vld [vmem:[#allocation5 + $0x54] sm:$0xf0]  ;;  %v720_v14 = vld [vmem:[#allocation5 + $0x54] sm:$0xf] }
  0x18   :  { %247 = vmatpush.bf16.msra.mxu1 %v645_v7  ;;  %v626_v15 = vld [vmem:[#allocation5 + $0x58] sm:$0xf0]  ;;  %v625_v16 = vor.u32 %v721_v13, %v624_v12  ;;  %v616_v18 = vld [vmem:[#allocation5 + $0x40] sm:$0xf]  ;;  %v719_v19 = vld [vmem:[#allocation5 + $0x44] sm:$0xf0] }
  0x19   :  { %v629_v17 = vor.u32 %v720_v14, %v626_v15  ;;  %v718_v20 = vld [vmem:[#allocation5 + $0x44] sm:$0xf]  ;;  %v618_v21 = vld [vmem:[#allocation5 + $0x48] sm:$0xf0]  ;;  %v617_v22 = vor.u32 %v719_v19, %v616_v18  ;;  %v608_v24 = vld [vmem:[#allocation5 + $0x30] sm:$0xf] }
  0x1a   :  { %v621_v23 = vor.u32 %v718_v20, %v618_v21  ;;  %v717_v25 = vld [vmem:[#allocation5 + $0x34] sm:$0xf0]  ;;  %v716_v26 = vld [vmem:[#allocation5 + $0x34] sm:$0xf]  ;;  %v610_v27 = vld [vmem:[#allocation5 + $0x38] sm:$0xf0] }
  0x1b   :  { %205 = vmatpush.bf16.msra.mxu0 %v633_v10  ;;  %v609_v28 = vor.u32 %v717_v25, %v608_v24  ;;  %v613_v29 = vor.u32 %v716_v26, %v610_v27  ;;  %v600_v30 = vld [vmem:[#allocation5 + $0x20] sm:$0xf]  ;;  %v715_v31 = vld [vmem:[#allocation5 + $0x24] sm:$0xf0]  ;;  %v714_v32 = vld [vmem:[#allocation5 + $0x24] sm:$0xf] }
  0x1c   :  { %248 = vmatpush.bf16.msra.mxu1 %v637_v11  ;;  %v602_v33 = vld [vmem:[#allocation5 + $0x28] sm:$0xf0]  ;;  %v601_v34 = vor.u32 %v715_v31, %v600_v30  ;;  %v592_v36 = vld [vmem:[#allocation5 + $0x10] sm:$0xf]  ;;  %v713_v37 = vld [vmem:[#allocation5 + $0x14] sm:$0xf0] }
  0x1d   :  { %v605_v35 = vor.u32 %v714_v32, %v602_v33  ;;  %v712_v38 = vld [vmem:[#allocation5 + $0x14] sm:$0xf]  ;;  %v594_v39 = vld [vmem:[#allocation5 + $0x18] sm:$0xf0]  ;;  %v593_v40 = vor.u32 %v713_v37, %v592_v36  ;;  %v584_v42 = vld [vmem:[#allocation5] sm:$0xf] }
  0x1e   :  { %v597_v41 = vor.u32 %v712_v38, %v594_v39  ;;  %v711_v43 = vld [vmem:[#allocation5 + $0x4] sm:$0xf0]  ;;  %v710_v44 = vld [vmem:[#allocation5 + $0x4] sm:$0xf]  ;;  %v586_v45 = vld [vmem:[#allocation5 + $0x8] sm:$0xf0] }
  0x1f   :  { %206 = vmatpush.bf16.msra.mxu0 %v625_v16  ;;  %v585_v46 = vor.u32 %v711_v43, %v584_v42  ;;  %v82_v47 = vld [vmem:[#allocation2] sm:$0xff]  ;;  %v83_v48 = vld [vmem:[#allocation2 + $0x8] sm:$0xff]  ;;  %v589_v49 = vor.u32 %v710_v44, %v586_v45  ;;  %v84_v51 = vld [vmem:[#allocation2 + $0x10] sm:$0xff]  ;;  %s567_s18 = sshll.u32 %s996_s5, 4  ;;  %s568_s18 = int_to_ptr.hbm [resolvable:$true] %s567_s18 }
  0x20   :  { %249 = vmatpush.bf16.msra.mxu1 %v629_v17  ;;  %v95_v50 = vpack.c.bf16 %v83_v48, %v82_v47  ;;  %v85_v52 = vld [vmem:[#allocation2 + $0x18] sm:$0xff]  ;;  %v86_v54 = vld [vmem:[#allocation2 + $0x20] sm:$0xff]  ;;  %v87_v55 = vld [vmem:[#allocation2 + $0x28] sm:$0xff] }
  0x21   :  { %v96_v53 = vpack.c.bf16 %v85_v52, %v84_v51  ;;  %v97_v56 = vpack.c.bf16 %v87_v55, %v86_v54  ;;  %v88_v57 = vld [vmem:[#allocation2 + $0x30] sm:$0xff]  ;;  %v89_v58 = vld [vmem:[#allocation2 + $0x38] sm:$0xff]  ;;  %v90_v60 = vld [vmem:[#allocation2 + $0x40] sm:$0xff] }
  0x22   :  { %v98_v59 = vpack.c.bf16 %v89_v58, %v88_v57  ;;  %v91_v61 = vld [vmem:[#allocation2 + $0x48] sm:$0xff]  ;;  %v732_v1 = vld [vmem:[#allocation8 + $0x30] sm:$0xff]  ;;  %v731_v3 = vld [vmem:[#allocation8 + $0x28] sm:$0xff] }
  0x23   :  { %207 = vmatpush.bf16.msra.mxu0 %v617_v22  ;;  %v99_v62 = vpack.c.bf16 %v91_v61, %v90_v60  ;;  %v733_v63 = vld [vmem:[#allocation8 + $0x38] sm:$0xff]  ;;  %v740_v2 = vld [vmem:[#allocation8 + $0x70] sm:$0xff]  ;;  %v739_v4 = vld [vmem:[#allocation8 + $0x68] sm:$0xff] }
  0x24   :  { %250 = vmatpush.bf16.msra.mxu1 %v621_v23  ;;  %v741_v0 = vld [vmem:[#allocation8 + $0x78] sm:$0xff]  ;;  %462 = vmatpush.bf16.msra.mxu2 %v733_v63  ;;  %v92_v5 = vld [vmem:[#allocation2 + $0x50] sm:$0xff]  ;;  %v93_v6 = vld [vmem:[#allocation2 + $0x58] sm:$0xff] }
  0x25   :  { %505 = vmatpush.bf16.msra.mxu3 %v741_v0  ;;  %v730_v7 = vld [vmem:[#allocation8 + $0x20] sm:$0xff]  ;;  %v100_v9 = vpack.c.bf16 %v93_v6, %v92_v5  ;;  %v94_v10 = vld [vmem:[#allocation2 + $0x60] sm:$0xff]  ;;  %v727_v16 = vld [vmem:[#allocation8 + $0x8] sm:$0xff] }
  0x26   :  { %v738_v8 = vld [vmem:[#allocation8 + $0x60] sm:$0xff]  ;;  %v101_v11 = vpack.c.bf16 %v94_v10, %v94_v10  ;;  %v729_v12 = vld [vmem:[#allocation8 + $0x18] sm:$0xff]  ;;  %v728_v14 = vld [vmem:[#allocation8 + $0x10] sm:$0xff] }
  0x27   :  { %208 = vmatpush.bf16.msra.mxu0 %v609_v28  ;;  %v737_v13 = vld [vmem:[#allocation8 + $0x58] sm:$0xff]  ;;  %v736_v15 = vld [vmem:[#allocation8 + $0x50] sm:$0xff]  ;;  %v735_v17 = vld [vmem:[#allocation8 + $0x48] sm:$0xff] }
  0x28   :  { %251 = vmatpush.bf16.msra.mxu1 %v613_v29  ;;  %463 = vmatpush.bf16.msra.mxu2 %v732_v1  ;;  %v726_v18 = vld [vmem:[#allocation8] sm:$0xff]  ;;  %v118_v20 = vld [vmem:[#allocation7] sm:$0x3] }
  0x29   :  { %506 = vmatpush.bf16.msra.mxu3 %v740_v2  ;;  %v734_v19 = vld [vmem:[#allocation8 + $0x40] sm:$0xff]  ;;  %v937_v23 = vperm.slane %v118_v20, 0  ;;  %v939_v24 = vperm.slane %v118_v20, 1 }
  0x2b   :  { %209 = vmatpush.bf16.msra.mxu0 %v601_v34 }
  0x2c   :  { %252 = vmatpush.bf16.msra.mxu1 %v605_v35  ;;  %464 = vmatpush.bf16.msra.mxu2 %v731_v3 }
  0x2d   :  { %507 = vmatpush.bf16.msra.mxu3 %v739_v4 }
  0x2f   :  { %210 = vmatpush.bf16.msra.mxu0 %v593_v40 }
  0x30   :  { %253 = vmatpush.bf16.msra.mxu1 %v597_v41  ;;  %465 = vmatpush.bf16.msra.mxu2 %v730_v7 }
  0x31   :  { %508 = vmatpush.bf16.msra.mxu3 %v738_v8 }
  0x33   :  { %211 = vmatpush.bf16.msra.mxu0 %v585_v46 }
  0x34   :  { %254 = vmatpush.bf16.msra.mxu1 %v589_v49  ;;  %466 = vmatpush.bf16.msra.mxu2 %v729_v12 }
  0x35   :  { %509 = vmatpush.bf16.msra.mxu3 %v737_v13 }
  0x36   :  { %212 = vmatmul.bf16.vlgmr.msra.gmra.mxu0 %v95_v50 }
  0x37   :  { %255 = vmatmul.bf16.vlgmr.msra.gmra.mxu1 %v95_v50 }
  0x38   :  { %467 = vmatpush.bf16.msra.mxu2 %v728_v14 }
  0x39   :  { %510 = vmatpush.bf16.msra.mxu3 %v736_v15 }
  0x3c   :  { %468 = vmatpush.bf16.msra.mxu2 %v727_v16 }
  0x3d   :  { %511 = vmatpush.bf16.msra.mxu3 %v735_v17 }
  0x40   :  { %469 = vmatpush.bf16.msra.mxu2 %v726_v18 }
  0x41   :  { %512 = vmatpush.bf16.msra.mxu3 %v734_v19 }
  0x46   :  { %217 = vmatmul.bf16.gmra.mxu0 %v96_v53 }
  0x47   :  { %260 = vmatmul.bf16.gmra.mxu1 %v96_v53 }
  0x56   :  { %222 = vmatmul.bf16.gmra.mxu0 %v97_v56 }
  0x57   :  { %265 = vmatmul.bf16.gmra.mxu1 %v97_v56 }
  0x66   :  { %227 = vmatmul.bf16.gmra.mxu0 %v98_v59 }
  0x67   :  { %270 = vmatmul.bf16.gmra.mxu1 %v98_v59 }
  0x76   :  { %232 = vmatmul.bf16.gmra.mxu0 %v99_v62 }
  0x77   :  { %275 = vmatmul.bf16.gmra.mxu1 %v99_v62 }
  0x86   :  { %237 = vmatmul.bf16.gmra.mxu0 %v100_v9 }
  0x87   :  { %280 = vmatmul.bf16.gmra.mxu1 %v100_v9 }
  0x96   :  { %242 = vmatmul.bf16.gmra.mxu0 %v101_v11 }
  0x97   :  { %285 = vmatmul.bf16.gmra.mxu1 %v101_v11 }
  0xb3   :  { %v213_v21 = vpop.f32.mrf.mxu0 }
  0xb4   :  { %v256_v22 = vpop.f32.mrf.mxu1  ;;  %v214_v25 = vadd.f32 %v213_v21, %v937_v23 }
  0xb5   :  { %v257_v26 = vadd.f32 %v256_v22, %v939_v24 }
  0xb6   :  { %v290_v31 = vmax.f32 %v214_v25, 0.0 }
  0xb7   :  { %v291_v33 = vmax.f32 %v257_v26, 0.0 }
  0xbb   :  { %v215_v27 = vpop.f32.mrf.mxu0 }
  0xbc   :  { %v216_v28 = vadd.f32 %v215_v27, %v937_v23  ;;  %v258_v29 = vpop.f32.mrf.mxu1 }
  0xbd   :  { %v259_v30 = vadd.f32 %v258_v29, %v939_v24 }
  0xbe   :  { %v292_v32 = vmax.f32 %v216_v28, 0.0 }
  0xbf   :  { %v293_v34 = vmax.f32 %v259_v30, 0.0 }
  0xc0   :  { %v316_v35 = vpack.c.bf16 %v292_v32, %v290_v31 }
  0xc1   :  { %v317_v36 = vpack.c.bf16 %v293_v34, %v291_v33 }
  0xc2   :  { %470 = vmatmul.bf16.vlgmr.msra.gmra.mxu2 %v316_v35 }
  0xc3   :  { %513 = vmatmul.bf16.vlgmr.msra.gmra.mxu3 %v317_v36  ;;  %v218_v37 = vpop.f32.mrf.mxu0 }
  0xc4   :  { %v261_v38 = vpop.f32.mrf.mxu1  ;;  %v219_v39 = vadd.f32 %v218_v37, %v937_v23 }
  0xc5   :  { %v262_v40 = vadd.f32 %v261_v38, %v939_v24 }
  0xc6   :  { %v294_v45 = vmax.f32 %v219_v39, 0.0 }
  0xc7   :  { %v295_v47 = vmax.f32 %v262_v40, 0.0 }
  0xcb   :  { %v220_v41 = vpop.f32.mrf.mxu0 }
  0xcc   :  { %v221_v42 = vadd.f32 %v220_v41, %v937_v23  ;;  %v263_v43 = vpop.f32.mrf.mxu1 }
  0xcd   :  { %v264_v44 = vadd.f32 %v263_v43, %v939_v24 }
  0xce   :  { %v296_v46 = vmax.f32 %v221_v42, 0.0 }
  0xcf   :  { %v297_v48 = vmax.f32 %v264_v44, 0.0 }
  0xd0   :  { %v318_v49 = vpack.c.bf16 %v296_v46, %v294_v45 }
  0xd1   :  { %v319_v50 = vpack.c.bf16 %v297_v48, %v295_v47 }
  0xd2   :  { %475 = vmatmul.bf16.gmra.mxu2 %v318_v49 }
  0xd3   :  { %518 = vmatmul.bf16.gmra.mxu3 %v319_v50  ;;  %v223_v51 = vpop.f32.mrf.mxu0 }
  0xd4   :  { %v266_v52 = vpop.f32.mrf.mxu1  ;;  %v224_v53 = vadd.f32 %v223_v51, %v937_v23 }
  0xd5   :  { %v267_v54 = vadd.f32 %v266_v52, %v939_v24 }
  0xd6   :  { %v298_v59 = vmax.f32 %v224_v53, 0.0 }
  0xd7   :  { %v299_v61 = vmax.f32 %v267_v54, 0.0 }
  0xdb   :  { %v225_v55 = vpop.f32.mrf.mxu0 }
  0xdc   :  { %v226_v56 = vadd.f32 %v225_v55, %v937_v23  ;;  %v268_v57 = vpop.f32.mrf.mxu1  ;;  %v970_v55 = vld [vmem:[%s995_s4] ss:$0 sm:$0xff]  ;;  %s888_s4 = smov [#allocation10]  }
  0xdd   :  { %v269_v58 = vadd.f32 %v268_v57, %v939_v24  ;;  %s565_s15 = sshll.u32 %s888_s4, 4  ;;  %s566_s15 = int_to_ptr.vmem [resolvable:$true] %s565_s15 }
  0xde   :  { %v300_v60 = vmax.f32 %v226_v56, 0.0 }
  0xdf   :  { %v301_v62 = vmax.f32 %v269_v58, 0.0 }
  0xe0   :  { %v320_v63 = vpack.c.bf16 %v300_v60, %v298_v59 }
  0xe1   :  { %v321_v0 = vpack.c.bf16 %v301_v62, %v299_v61 }
  0xe2   :  { %480 = vmatmul.bf16.gmra.mxu2 %v320_v63 }
  0xe3   :  { %523 = vmatmul.bf16.gmra.mxu3 %v321_v0  ;;  %v228_v1 = vpop.f32.mrf.mxu0 }
  0xe4   :  { %v271_v2 = vpop.f32.mrf.mxu1  ;;  %v229_v3 = vadd.f32 %v228_v1, %v937_v23 }
  0xe5   :  { %v272_v4 = vadd.f32 %v271_v2, %v939_v24 }
  0xe6   :  { %v302_v9 = vmax.f32 %v229_v3, 0.0 }
  0xe7   :  { %v303_v11 = vmax.f32 %v272_v4, 0.0 }
  0xeb   :  { %v230_v5 = vpop.f32.mrf.mxu0 }
  0xec   :  { %v231_v6 = vadd.f32 %v230_v5, %v937_v23  ;;  %v273_v7 = vpop.f32.mrf.mxu1 }
  0xed   :  { %v274_v8 = vadd.f32 %v273_v7, %v939_v24 }
  0xee   :  { %v304_v10 = vmax.f32 %v231_v6, 0.0 }
  0xef   :  { %v305_v12 = vmax.f32 %v274_v8, 0.0 }
  0xf0   :  { %v322_v13 = vpack.c.bf16 %v304_v10, %v302_v9 }
  0xf1   :  { %v323_v14 = vpack.c.bf16 %v305_v12, %v303_v11 }
  0xf2   :  { %485 = vmatmul.bf16.gmra.mxu2 %v322_v13 }
  0xf3   :  { %528 = vmatmul.bf16.gmra.mxu3 %v323_v14  ;;  %v233_v15 = vpop.f32.mrf.mxu0 }
  0xf4   :  { %v276_v16 = vpop.f32.mrf.mxu1  ;;  %v234_v17 = vadd.f32 %v233_v15, %v937_v23 }
  0xf5   :  { %v277_v18 = vadd.f32 %v276_v16, %v939_v24 }
  0xf6   :  { %v306_v25 = vmax.f32 %v234_v17, 0.0 }
  0xf7   :  { %v307_v27 = vmax.f32 %v277_v18, 0.0 }
  0xfb   :  { %v235_v19 = vpop.f32.mrf.mxu0 }
  0xfc   :  { %v236_v20 = vadd.f32 %v235_v19, %v937_v23  ;;  %v278_v21 = vpop.f32.mrf.mxu1 }
  0xfd   :  { %v279_v22 = vadd.f32 %v278_v21, %v939_v24 }
  0xfe   :  { %v308_v26 = vmax.f32 %v236_v20, 0.0 }
  0xff   :  { %v309_v28 = vmax.f32 %v279_v22, 0.0 }
 0x100   :  { %v324_v29 = vpack.c.bf16 %v308_v26, %v306_v25 }
 0x101   :  { %v325_v30 = vpack.c.bf16 %v309_v28, %v307_v27 }
 0x102   :  { %490 = vmatmul.bf16.gmra.mxu2 %v324_v29 }
 0x103   :  { %533 = vmatmul.bf16.gmra.mxu3 %v325_v30  ;;  %v238_v31 = vpop.f32.mrf.mxu0 }
 0x104   :  { %v281_v32 = vpop.f32.mrf.mxu1  ;;  %v239_v33 = vadd.f32 %v238_v31, %v937_v23 }
 0x105   :  { %v282_v34 = vadd.f32 %v281_v32, %v939_v24 }
 0x106   :  { %v310_v39 = vmax.f32 %v239_v33, 0.0 }
 0x107   :  { %v311_v41 = vmax.f32 %v282_v34, 0.0 }
 0x10b   :  { %v240_v35 = vpop.f32.mrf.mxu0 }
 0x10c   :  { %v241_v36 = vadd.f32 %v240_v35, %v937_v23  ;;  %v283_v37 = vpop.f32.mrf.mxu1 }
 0x10d   :  { %v284_v38 = vadd.f32 %v283_v37, %v939_v24 }
 0x10e   :  { %v312_v40 = vmax.f32 %v241_v36, 0.0 }
 0x10f   :  { %v313_v42 = vmax.f32 %v284_v38, 0.0 }
 0x110   :  { %v326_v43 = vpack.c.bf16 %v312_v40, %v310_v39 }
 0x111   :  { %v327_v44 = vpack.c.bf16 %v313_v42, %v311_v41 }
 0x112   :  { %495 = vmatmul.bf16.gmra.mxu2 %v326_v43 }
 0x113   :  { %538 = vmatmul.bf16.gmra.mxu3 %v327_v44  ;;  %v243_v45 = vpop.f32.mrf.mxu0 }
 0x114   :  { %v286_v46 = vpop.f32.mrf.mxu1  ;;  %v244_v47 = vadd.f32 %v243_v45, %v937_v23 }
 0x115   :  { %v287_v48 = vadd.f32 %v286_v46, %v939_v24 }
 0x116   :  { %v314_v49 = vmax.f32 %v244_v47, 0.0 }
 0x117   :  { %v315_v50 = vmax.f32 %v287_v48, 0.0 }
 0x118   :  { %v328_v53 = vpack.c.bf16 %v314_v49, %v314_v49 }
 0x119   :  { %v329_v54 = vpack.c.bf16 %v315_v50, %v315_v50 }
 0x11b   :  { %v245_v51 = vpop.f32.mrf.mxu0 }
 0x11c   :  { %v288_v52 = vpop.f32.mrf.mxu1 }
 0x122   :  { %500 = vmatmul.bf16.gmra.mxu2 %v328_v53 }
 0x123   :  { %543 = vmatmul.bf16.gmra.mxu3 %v329_v54 }
 0x145   :  { %v471_v56 = vpop.f32.mrf.mxu2 }
 0x146   :  { %v472_v57 = vadd.f32 %v970_v55, %v471_v56  ;;  %v514_v58 = vpop.f32.mrf.mxu3 }
 0x148   :  { %v515_v23 = vadd.f32 %v514_v58, %v472_v57 }
 0x14a   :  { %548 = vst [vmem:[#allocation10] sm:$0xff] %v515_v23 }
 0x14d   :  { %v473_v24 = vpop.f32.mrf.mxu2 }
 0x14e   :  { %v474_v59 = vadd.f32 %v970_v55, %v473_v24  ;;  %v516_v60 = vpop.f32.mrf.mxu3 }
 0x150   :  { %v517_v61 = vadd.f32 %v516_v60, %v474_v59 }
 0x152   :  { %549 = vst [vmem:[#allocation10 + $0x8] sm:$0xff] %v517_v61 }
 0x155   :  { %v476_v62 = vpop.f32.mrf.mxu2 }
 0x156   :  { %v477_v63 = vadd.f32 %v970_v55, %v476_v62  ;;  %v519_v0 = vpop.f32.mrf.mxu3 }
 0x158   :  { %v520_v1 = vadd.f32 %v519_v0, %v477_v63 }
 0x15a   :  { %550 = vst [vmem:[#allocation10 + $0x10] sm:$0xff] %v520_v1 }
 0x15d   :  { %v478_v2 = vpop.f32.mrf.mxu2 }
 0x15e   :  { %v479_v3 = vadd.f32 %v970_v55, %v478_v2  ;;  %v521_v4 = vpop.f32.mrf.mxu3 }
 0x160   :  { %v522_v5 = vadd.f32 %v521_v4, %v479_v3 }
 0x162   :  { %551 = vst [vmem:[#allocation10 + $0x18] sm:$0xff] %v522_v5 }
 0x165   :  { %v481_v6 = vpop.f32.mrf.mxu2 }
 0x166   :  { %v482_v7 = vadd.f32 %v970_v55, %v481_v6  ;;  %v524_v8 = vpop.f32.mrf.mxu3 }
 0x168   :  { %v525_v9 = vadd.f32 %v524_v8, %v482_v7 }
 0x16a   :  { %552 = vst [vmem:[#allocation10 + $0x20] sm:$0xff] %v525_v9 }
 0x16d   :  { %v483_v10 = vpop.f32.mrf.mxu2 }
 0x16e   :  { %v484_v11 = vadd.f32 %v970_v55, %v483_v10  ;;  %v526_v12 = vpop.f32.mrf.mxu3 }
 0x170   :  { %v527_v13 = vadd.f32 %v526_v12, %v484_v11 }
 0x172   :  { %553 = vst [vmem:[#allocation10 + $0x28] sm:$0xff] %v527_v13 }
 0x175   :  { %v486_v14 = vpop.f32.mrf.mxu2 }
 0x176   :  { %v487_v15 = vadd.f32 %v970_v55, %v486_v14  ;;  %v529_v16 = vpop.f32.mrf.mxu3 }
 0x178   :  { %v530_v17 = vadd.f32 %v529_v16, %v487_v15 }
 0x17a   :  { %554 = vst [vmem:[#allocation10 + $0x30] sm:$0xff] %v530_v17 }
 0x17d   :  { %v488_v18 = vpop.f32.mrf.mxu2 }
 0x17e   :  { %v489_v19 = vadd.f32 %v970_v55, %v488_v18  ;;  %v531_v20 = vpop.f32.mrf.mxu3 }
 0x180   :  { %v532_v21 = vadd.f32 %v531_v20, %v489_v19 }
 0x182   :  { %555 = vst [vmem:[#allocation10 + $0x38] sm:$0xff] %v532_v21 }
 0x185   :  { %v491_v22 = vpop.f32.mrf.mxu2 }
 0x186   :  { %v492_v25 = vadd.f32 %v970_v55, %v491_v22  ;;  %v534_v26 = vpop.f32.mrf.mxu3 }
 0x188   :  { %v535_v27 = vadd.f32 %v534_v26, %v492_v25 }
 0x18a   :  { %556 = vst [vmem:[#allocation10 + $0x40] sm:$0xff] %v535_v27 }
 0x18d   :  { %v493_v28 = vpop.f32.mrf.mxu2 }
 0x18e   :  { %v494_v29 = vadd.f32 %v970_v55, %v493_v28  ;;  %v536_v30 = vpop.f32.mrf.mxu3 }
 0x190   :  { %v537_v31 = vadd.f32 %v536_v30, %v494_v29 }
 0x192   :  { %557 = vst [vmem:[#allocation10 + $0x48] sm:$0xff] %v537_v31 }
 0x195   :  { %v496_v32 = vpop.f32.mrf.mxu2 }
 0x196   :  { %v497_v33 = vadd.f32 %v970_v55, %v496_v32  ;;  %v539_v34 = vpop.f32.mrf.mxu3 }
 0x198   :  { %v540_v35 = vadd.f32 %v539_v34, %v497_v33 }
 0x19a   :  { %558 = vst [vmem:[#allocation10 + $0x50] sm:$0xff] %v540_v35 }
 0x19d   :  { %v498_v36 = vpop.f32.mrf.mxu2 }
 0x19e   :  { %v499_v37 = vadd.f32 %v970_v55, %v498_v36  ;;  %v541_v38 = vpop.f32.mrf.mxu3 }
 0x1a0   :  { %v542_v39 = vadd.f32 %v541_v38, %v499_v37 }
 0x1a2   :  { %559 = vst [vmem:[#allocation10 + $0x58] sm:$0xff] %v542_v39 }
 0x1a5   :  { %v501_v40 = vpop.f32.mrf.mxu2 }
 0x1a6   :  { %v502_v41 = vadd.f32 %v970_v55, %v501_v40  ;;  %v544_v42 = vpop.f32.mrf.mxu3 }
 0x1a8   :  { %v545_v43 = vadd.f32 %v544_v42, %v502_v41 }
 0x1aa   :  { %560 = vst [vmem:[#allocation10 + $0x60] sm:$0xff] %v545_v43 }
 0x1ab   :  { %573 = dma.vmem_to_hbm [thread:$0]  %s566_s15, 1664, %s568_s18, [#allocation4], %s881_s26, %s881_s26, %s882_s27  }
 0x1ad   :  { %v503_v44 = vpop.f32.mrf.mxu2 }
 0x1ae   :  { %v546_v45 = vpop.f32.mrf.mxu3 }
 0x1af   :  { %878 = dma.done.wait [#allocation4], 1664  }
 0x1b0   :  { %879 = vsyncadd [#allocation4], 4294965632 }
 0x1b1   :  { %578 = vsyncpa [#allocation3], 1 }
 0x1b2   :  { %579 = vsyncpa [#allocation6], 1 }
 0x1b3   :  { %580 = vsyncpa [#allocation9], 1 }
 0x1b4   :  { %581 = vsyncpa [#allocation4], 1 }

// kernel: tpu_custom_call.1
= control target key start
LH: loop header
LB: loop body
LE: loop exit
PB: predicated region body
PF: predicated region fallthrough
CT: control target
= control target key end

     0   :  { %10 = vsyncpa [#allocation3], 0  ;;  %s991_s0 = inlined_call_operand.hbm [shape: f32[104,128], index: 0, kind: input, shape index: {}]   ;;  %s992_s1 = inlined_call_operand.hbm [shape: bf16[128,256], index: 1, kind: input, shape index: {}]   ;;  %s993_s2 = inlined_call_operand.hbm [shape: f32[1,256], index: 2, kind: input, shape index: {}]   ;;  %s994_s3 = inlined_call_operand.hbm [shape: bf16[256,128], index: 3, kind: input, shape index: {}]   ;;  %s995_s4 = inlined_call_operand.vmem [shape: f32[1,128], index: 4, kind: input, shape index: {}]   ;;  %s996_s5 = inlined_call_operand.hbm [shape: f32[104,128], index: 5, kind: output, shape index: {}]  }
   0x1   :  { %11 = vsyncpa [#allocation6], 0 }
   0x2   :  { %12 = vsyncpa [#allocation9], 0 }
   0x3   :  { %13 = vsyncpa [#allocation4], 0  ;;  %s31_s20 = sshll.u32 %s992_s1, 4  ;;  %s880_s21 = smov [#allocation5]   ;;  %s32_s20 = int_to_ptr.hbm [resolvable:$true] %s31_s20 }
   0x4   :  { %s33_s22 = sshll.u32 %s880_s21, 4  ;;  %s18_s25 = sshll.u32 %s991_s0, 4  ;;  %s34_s22 = int_to_ptr.vmem [resolvable:$true] %s33_s22  ;;  %s19_s25 = int_to_ptr.hbm [resolvable:$true] %s18_s25 }
   0x5   :  { %s881_s26 = smov 128   ;;  %s882_s27 = smov 8  }
   0x6   :  { %39 = dma.hbm_to_vmem [thread:$0]  %s32_s20, 2048, %s34_s22, [#allocation6], %s881_s26, %s881_s26, %s882_s27  }
   0x7   :  { %s883_s28 = smov [#allocation2]   ;;  %s45_s1 = sshll.u32 %s993_s2, 4  ;;  %s46_s1 = int_to_ptr.hbm [resolvable:$true] %s45_s1 }
   0x8   :  { %s20_s29 = sshll.u32 %s883_s28, 4  ;;  %s55_s8 = sshll.u32 %s994_s3, 4  ;;  %s21_s29 = int_to_ptr.vmem [resolvable:$true] %s20_s29  ;;  %s56_s8 = int_to_ptr.hbm [resolvable:$true] %s55_s8 }
   0x9   :  { %26 = dma.hbm_to_vmem [thread:$0]  %s19_s25, 1664, %s21_s29, [#allocation3], %s881_s26, %s881_s26, %s882_s27  }
   0xa   :  { %s884_s9 = smov [#allocation7]   ;;  %s885_s11 = smov [#allocation8]  }
   0xb   :  { %s47_s10 = sshll.u32 %s884_s9, 4  ;;  %s57_s12 = sshll.u32 %s885_s11, 4  ;;  %s48_s10 = int_to_ptr.vmem [resolvable:$true] %s47_s10  ;;  %s58_s12 = int_to_ptr.vmem [resolvable:$true] %s57_s12 }
   0xc   :  { %50 = dma.hbm_to_vmem [thread:$0]  %s46_s1, 32, %s48_s10, [#allocation6]  }
   0xd   :  { %s886_s13 = smov 64   ;;  %s887_s2 = smov 4  }
   0xe   :  { %63 = dma.hbm_to_vmem [thread:$0]  %s56_s8, 2048, %s58_s12, [#allocation9], %s886_s13, %s886_s13, %s887_s2  }
   0xf   :  { %872 = dma.done.wait [#allocation3], 1664  }
  0x10   :  { %873 = vsyncadd [#allocation3], 4294965632 }
  0x11   :  { %874 = dma.done.wait [#allocation6], 2080  }
  0x12   :  { %875 = vsyncadd [#allocation6], 4294965216 }
  0x13   :  { %876 = dma.done.wait [#allocation9], 2048  }
  0x14   :  { %877 = vsyncadd [#allocation9], 4294965248  ;;  %v640_v0 = vld [vmem:[#allocation5 + $0x70] sm:$0xf]  ;;  %v725_v1 = vld [vmem:[#allocation5 + $0x74] sm:$0xf0] }
  0x15   :  { %v724_v2 = vld [vmem:[#allocation5 + $0x74] sm:$0xf]  ;;  %v641_v3 = vor.u32 %v725_v1, %v640_v0  ;;  %v642_v4 = vld [vmem:[#allocation5 + $0x78] sm:$0xf0]  ;;  %v632_v5 = vld [vmem:[#allocation5 + $0x60] sm:$0xf] }
  0x16   :  { %v723_v6 = vld [vmem:[#allocation5 + $0x64] sm:$0xf0]  ;;  %v645_v7 = vor.u32 %v724_v2, %v642_v4  ;;  %v722_v8 = vld [vmem:[#allocation5 + $0x64] sm:$0xf]  ;;  %v634_v9 = vld [vmem:[#allocation5 + $0x68] sm:$0xf0] }
  0x17   :  { %204 = vmatpush.bf16.msra.mxu0 %v641_v3  ;;  %v633_v10 = vor.u32 %v723_v6, %v632_v5  ;;  %v637_v11 = vor.u32 %v722_v8, %v634_v9  ;;  %v624_v12 = vld [vmem:[#allocation5 + $0x50] sm:$0xf]  ;;  %v721_v13 = vld [vmem:[#allocation5 + $0x54] sm:$0xf0]  ;;  %v720_v14 = vld [vmem:[#allocation5 + $0x54] sm:$0xf] }
  0x18   :  { %247 = vmatpush.bf16.msra.mxu1 %v645_v7  ;;  %v626_v15 = vld [vmem:[#allocation5 + $0x58] sm:$0xf0]  ;;  %v625_v16 = vor.u32 %v721_v13, %v624_v12  ;;  %v616_v18 = vld [vmem:[#allocation5 + $0x40] sm:$0xf]  ;;  %v719_v19 = vld [vmem:[#allocation5 + $0x44] sm:$0xf0] }
  0x19   :  { %v629_v17 = vor.u32 %v720_v14, %v626_v15  ;;  %v718_v20 = vld [vmem:[#allocation5 + $0x44] sm:$0xf]  ;;  %v618_v21 = vld [vmem:[#allocation5 + $0x48] sm:$0xf0]  ;;  %v617_v22 = vor.u32 %v719_v19, %v616_v18  ;;  %v608_v24 = vld [vmem:[#allocation5 + $0x30] sm:$0xf] }
  0x1a   :  { %v621_v23 = vor.u32 %v718_v20, %v618_v21  ;;  %v717_v25 = vld [vmem:[#allocation5 + $0x34] sm:$0xf0]  ;;  %v716_v26 = vld [vmem:[#allocation5 + $0x34] sm:$0xf]  ;;  %v610_v27 = vld [vmem:[#allocation5 + $0x38] sm:$0xf0] }
  0x1b   :  { %205 = vmatpush.bf16.msra.mxu0 %v633_v10  ;;  %v609_v28 = vor.u32 %v717_v25, %v608_v24  ;;  %v613_v29 = vor.u32 %v716_v26, %v610_v27  ;;  %v600_v30 = vld [vmem:[#allocation5 + $0x20] sm:$0xf]  ;;  %v715_v31 = vld [vmem:[#allocation5 + $0x24] sm:$0xf0]  ;;  %v714_v32 = vld [vmem:[#allocation5 + $0x24] sm:$0xf] }
  0x1c   :  { %248 = vmatpush.bf16.msra.mxu1 %v637_v11  ;;  %v602_v33 = vld [vmem:[#allocation5 + $0x28] sm:$0xf0]  ;;  %v601_v34 = vor.u32 %v715_v31, %v600_v30  ;;  %v592_v36 = vld [vmem:[#allocation5 + $0x10] sm:$0xf]  ;;  %v713_v37 = vld [vmem:[#allocation5 + $0x14] sm:$0xf0] }
  0x1d   :  { %v605_v35 = vor.u32 %v714_v32, %v602_v33  ;;  %v712_v38 = vld [vmem:[#allocation5 + $0x14] sm:$0xf]  ;;  %v594_v39 = vld [vmem:[#allocation5 + $0x18] sm:$0xf0]  ;;  %v593_v40 = vor.u32 %v713_v37, %v592_v36  ;;  %v584_v42 = vld [vmem:[#allocation5] sm:$0xf] }
  0x1e   :  { %v597_v41 = vor.u32 %v712_v38, %v594_v39  ;;  %v711_v43 = vld [vmem:[#allocation5 + $0x4] sm:$0xf0]  ;;  %v710_v44 = vld [vmem:[#allocation5 + $0x4] sm:$0xf]  ;;  %v586_v45 = vld [vmem:[#allocation5 + $0x8] sm:$0xf0] }
  0x1f   :  { %206 = vmatpush.bf16.msra.mxu0 %v625_v16  ;;  %v585_v46 = vor.u32 %v711_v43, %v584_v42  ;;  %v82_v47 = vld [vmem:[#allocation2] sm:$0xff]  ;;  %v83_v48 = vld [vmem:[#allocation2 + $0x8] sm:$0xff]  ;;  %v589_v49 = vor.u32 %v710_v44, %v586_v45  ;;  %v84_v51 = vld [vmem:[#allocation2 + $0x10] sm:$0xff]  ;;  %s567_s18 = sshll.u32 %s996_s5, 4  ;;  %s568_s18 = int_to_ptr.hbm [resolvable:$true] %s567_s18 }
  0x20   :  { %249 = vmatpush.bf16.msra.mxu1 %v629_v17  ;;  %v95_v50 = vpack.c.bf16 %v83_v48, %v82_v47  ;;  %v85_v52 = vld [vmem:[#allocation2 + $0x18] sm:$0xff]  ;;  %v86_v54 = vld [vmem:[#allocation2 + $0x20] sm:$0xff]  ;;  %v87_v55 = vld [vmem:[#allocation2 + $0x28] sm:$0xff] }
  0x21   :  { %v96_v53 = vpack.c.bf16 %v85_v52, %v84_v51  ;;  %v97_v56 = vpack.c.bf16 %v87_v55, %v86_v54  ;;  %v88_v57 = vld [vmem:[#allocation2 + $0x30] sm:$0xff]  ;;  %v89_v58 = vld [vmem:[#allocation2 + $0x38] sm:$0xff]  ;;  %v90_v60 = vld [vmem:[#allocation2 + $0x40] sm:$0xff] }
  0x22   :  { %v98_v59 = vpack.c.bf16 %v89_v58, %v88_v57  ;;  %v91_v61 = vld [vmem:[#allocation2 + $0x48] sm:$0xff]  ;;  %v732_v1 = vld [vmem:[#allocation8 + $0x30] sm:$0xff]  ;;  %v731_v3 = vld [vmem:[#allocation8 + $0x28] sm:$0xff] }
  0x23   :  { %207 = vmatpush.bf16.msra.mxu0 %v617_v22  ;;  %v99_v62 = vpack.c.bf16 %v91_v61, %v90_v60  ;;  %v733_v63 = vld [vmem:[#allocation8 + $0x38] sm:$0xff]  ;;  %v740_v2 = vld [vmem:[#allocation8 + $0x70] sm:$0xff]  ;;  %v739_v4 = vld [vmem:[#allocation8 + $0x68] sm:$0xff] }
  0x24   :  { %250 = vmatpush.bf16.msra.mxu1 %v621_v23  ;;  %v741_v0 = vld [vmem:[#allocation8 + $0x78] sm:$0xff]  ;;  %462 = vmatpush.bf16.msra.mxu2 %v733_v63  ;;  %v92_v5 = vld [vmem:[#allocation2 + $0x50] sm:$0xff]  ;;  %v93_v6 = vld [vmem:[#allocation2 + $0x58] sm:$0xff] }
  0x25   :  { %505 = vmatpush.bf16.msra.mxu3 %v741_v0  ;;  %v730_v7 = vld [vmem:[#allocation8 + $0x20] sm:$0xff]  ;;  %v100_v9 = vpack.c.bf16 %v93_v6, %v92_v5  ;;  %v94_v10 = vld [vmem:[#allocation2 + $0x60] sm:$0xff]  ;;  %v727_v16 = vld [vmem:[#allocation8 + $0x8] sm:$0xff] }
  0x26   :  { %v738_v8 = vld [vmem:[#allocation8 + $0x60] sm:$0xff]  ;;  %v101_v11 = vpack.c.bf16 %v94_v10, %v94_v10  ;;  %v729_v12 = vld [vmem:[#allocation8 + $0x18] sm:$0xff]  ;;  %v728_v14 = vld [vmem:[#allocation8 + $0x10] sm:$0xff] }
  0x27   :  { %208 = vmatpush.bf16.msra.mxu0 %v609_v28  ;;  %v737_v13 = vld [vmem:[#allocation8 + $0x58] sm:$0xff]  ;;  %v736_v15 = vld [vmem:[#allocation8 + $0x50] sm:$0xff]  ;;  %v735_v17 = vld [vmem:[#allocation8 + $0x48] sm:$0xff] }
  0x28   :  { %251 = vmatpush.bf16.msra.mxu1 %v613_v29  ;;  %463 = vmatpush.bf16.msra.mxu2 %v732_v1  ;;  %v726_v18 = vld [vmem:[#allocation8] sm:$0xff]  ;;  %v118_v20 = vld [vmem:[#allocation7] sm:$0x3] }
  0x29   :  { %506 = vmatpush.bf16.msra.mxu3 %v740_v2  ;;  %v734_v19 = vld [vmem:[#allocation8 + $0x40] sm:$0xff]  ;;  %v937_v23 = vperm.slane %v118_v20, 0  ;;  %v939_v24 = vperm.slane %v118_v20, 1 }
  0x2b   :  { %209 = vmatpush.bf16.msra.mxu0 %v601_v34 }
  0x2c   :  { %252 = vmatpush.bf16.msra.mxu1 %v605_v35  ;;  %464 = vmatpush.bf16.msra.mxu2 %v731_v3 }
  0x2d   :  { %507 = vmatpush.bf16.msra.mxu3 %v739_v4 }
  0x2f   :  { %210 = vmatpush.bf16.msra.mxu0 %v593_v40 }
  0x30   :  { %253 = vmatpush.bf16.msra.mxu1 %v597_v41  ;;  %465 = vmatpush.bf16.msra.mxu2 %v730_v7 }
  0x31   :  { %508 = vmatpush.bf16.msra.mxu3 %v738_v8 }
  0x33   :  { %211 = vmatpush.bf16.msra.mxu0 %v585_v46 }
  0x34   :  { %254 = vmatpush.bf16.msra.mxu1 %v589_v49  ;;  %466 = vmatpush.bf16.msra.mxu2 %v729_v12 }
  0x35   :  { %509 = vmatpush.bf16.msra.mxu3 %v737_v13 }
  0x36   :  { %212 = vmatmul.bf16.vlgmr.msra.gmra.mxu0 %v95_v50 }
  0x37   :  { %255 = vmatmul.bf16.vlgmr.msra.gmra.mxu1 %v95_v50 }
  0x38   :  { %467 = vmatpush.bf16.msra.mxu2 %v728_v14 }
  0x39   :  { %510 = vmatpush.bf16.msra.mxu3 %v736_v15 }
  0x3c   :  { %468 = vmatpush.bf16.msra.mxu2 %v727_v16 }
  0x3d   :  { %511 = vmatpush.bf16.msra.mxu3 %v735_v17 }
  0x40   :  { %469 = vmatpush.bf16.msra.mxu2 %v726_v18 }
  0x41   :  { %512 = vmatpush.bf16.msra.mxu3 %v734_v19 }
  0x46   :  { %217 = vmatmul.bf16.gmra.mxu0 %v96_v53 }
  0x47   :  { %260 = vmatmul.bf16.gmra.mxu1 %v96_v53 }
  0x56   :  { %222 = vmatmul.bf16.gmra.mxu0 %v97_v56 }
  0x57   :  { %265 = vmatmul.bf16.gmra.mxu1 %v97_v56 }
  0x66   :  { %227 = vmatmul.bf16.gmra.mxu0 %v98_v59 }
  0x67   :  { %270 = vmatmul.bf16.gmra.mxu1 %v98_v59 }
  0x76   :  { %232 = vmatmul.bf16.gmra.mxu0 %v99_v62 }
  0x77   :  { %275 = vmatmul.bf16.gmra.mxu1 %v99_v62 }
  0x86   :  { %237 = vmatmul.bf16.gmra.mxu0 %v100_v9 }
  0x87   :  { %280 = vmatmul.bf16.gmra.mxu1 %v100_v9 }
  0x96   :  { %242 = vmatmul.bf16.gmra.mxu0 %v101_v11 }
  0x97   :  { %285 = vmatmul.bf16.gmra.mxu1 %v101_v11 }
  0xb3   :  { %v213_v21 = vpop.f32.mrf.mxu0 }
  0xb4   :  { %v256_v22 = vpop.f32.mrf.mxu1  ;;  %v214_v25 = vadd.f32 %v213_v21, %v937_v23 }
  0xb5   :  { %v257_v26 = vadd.f32 %v256_v22, %v939_v24 }
  0xb6   :  { %v290_v31 = vmax.f32 %v214_v25, 0.0 }
  0xb7   :  { %v291_v33 = vmax.f32 %v257_v26, 0.0 }
  0xbb   :  { %v215_v27 = vpop.f32.mrf.mxu0 }
  0xbc   :  { %v216_v28 = vadd.f32 %v215_v27, %v937_v23  ;;  %v258_v29 = vpop.f32.mrf.mxu1 }
  0xbd   :  { %v259_v30 = vadd.f32 %v258_v29, %v939_v24 }
  0xbe   :  { %v292_v32 = vmax.f32 %v216_v28, 0.0 }
  0xbf   :  { %v293_v34 = vmax.f32 %v259_v30, 0.0 }
  0xc0   :  { %v316_v35 = vpack.c.bf16 %v292_v32, %v290_v31 }
  0xc1   :  { %v317_v36 = vpack.c.bf16 %v293_v34, %v291_v33 }
  0xc2   :  { %470 = vmatmul.bf16.vlgmr.msra.gmra.mxu2 %v316_v35 }
  0xc3   :  { %513 = vmatmul.bf16.vlgmr.msra.gmra.mxu3 %v317_v36  ;;  %v218_v37 = vpop.f32.mrf.mxu0 }
  0xc4   :  { %v261_v38 = vpop.f32.mrf.mxu1  ;;  %v219_v39 = vadd.f32 %v218_v37, %v937_v23 }
  0xc5   :  { %v262_v40 = vadd.f32 %v261_v38, %v939_v24 }
  0xc6   :  { %v294_v45 = vmax.f32 %v219_v39, 0.0 }
  0xc7   :  { %v295_v47 = vmax.f32 %v262_v40, 0.0 }
  0xcb   :  { %v220_v41 = vpop.f32.mrf.mxu0 }
  0xcc   :  { %v221_v42 = vadd.f32 %v220_v41, %v937_v23  ;;  %v263_v43 = vpop.f32.mrf.mxu1 }
  0xcd   :  { %v264_v44 = vadd.f32 %v263_v43, %v939_v24 }
  0xce   :  { %v296_v46 = vmax.f32 %v221_v42, 0.0 }
  0xcf   :  { %v297_v48 = vmax.f32 %v264_v44, 0.0 }
  0xd0   :  { %v318_v49 = vpack.c.bf16 %v296_v46, %v294_v45 }
  0xd1   :  { %v319_v50 = vpack.c.bf16 %v297_v48, %v295_v47 }
  0xd2   :  { %475 = vmatmul.bf16.gmra.mxu2 %v318_v49 }
  0xd3   :  { %518 = vmatmul.bf16.gmra.mxu3 %v319_v50  ;;  %v223_v51 = vpop.f32.mrf.mxu0 }
  0xd4   :  { %v266_v52 = vpop.f32.mrf.mxu1  ;;  %v224_v53 = vadd.f32 %v223_v51, %v937_v23 }
  0xd5   :  { %v267_v54 = vadd.f32 %v266_v52, %v939_v24 }
  0xd6   :  { %v298_v59 = vmax.f32 %v224_v53, 0.0 }
  0xd7   :  { %v299_v61 = vmax.f32 %v267_v54, 0.0 }
  0xdb   :  { %v225_v55 = vpop.f32.mrf.mxu0 }
  0xdc   :  { %v226_v56 = vadd.f32 %v225_v55, %v937_v23  ;;  %v268_v57 = vpop.f32.mrf.mxu1  ;;  %v970_v55 = vld [vmem:[%s995_s4] ss:$0 sm:$0xff]  ;;  %s888_s4 = smov [#allocation10]  }
  0xdd   :  { %v269_v58 = vadd.f32 %v268_v57, %v939_v24  ;;  %s565_s15 = sshll.u32 %s888_s4, 4  ;;  %s566_s15 = int_to_ptr.vmem [resolvable:$true] %s565_s15 }
  0xde   :  { %v300_v60 = vmax.f32 %v226_v56, 0.0 }
  0xdf   :  { %v301_v62 = vmax.f32 %v269_v58, 0.0 }
  0xe0   :  { %v320_v63 = vpack.c.bf16 %v300_v60, %v298_v59 }
  0xe1   :  { %v321_v0 = vpack.c.bf16 %v301_v62, %v299_v61 }
  0xe2   :  { %480 = vmatmul.bf16.gmra.mxu2 %v320_v63 }
  0xe3   :  { %523 = vmatmul.bf16.gmra.mxu3 %v321_v0  ;;  %v228_v1 = vpop.f32.mrf.mxu0 }
  0xe4   :  { %v271_v2 = vpop.f32.mrf.mxu1  ;;  %v229_v3 = vadd.f32 %v228_v1, %v937_v23 }
  0xe5   :  { %v272_v4 = vadd.f32 %v271_v2, %v939_v24 }
  0xe6   :  { %v302_v9 = vmax.f32 %v229_v3, 0.0 }
  0xe7   :  { %v303_v11 = vmax.f32 %v272_v4, 0.0 }
  0xeb   :  { %v230_v5 = vpop.f32.mrf.mxu0 }
  0xec   :  { %v231_v6 = vadd.f32 %v230_v5, %v937_v23  ;;  %v273_v7 = vpop.f32.mrf.mxu1 }
  0xed   :  { %v274_v8 = vadd.f32 %v273_v7, %v939_v24 }
  0xee   :  { %v304_v10 = vmax.f32 %v231_v6, 0.0 }
  0xef   :  { %v305_v12 = vmax.f32 %v274_v8, 0.0 }
  0xf0   :  { %v322_v13 = vpack.c.bf16 %v304_v10, %v302_v9 }
  0xf1   :  { %v323_v14 = vpack.c.bf16 %v305_v12, %v303_v11 }
  0xf2   :  { %485 = vmatmul.bf16.gmra.mxu2 %v322_v13 }
  0xf3   :  { %528 = vmatmul.bf16.gmra.mxu3 %v323_v14  ;;  %v233_v15 = vpop.f32.mrf.mxu0 }
  0xf4   :  { %v276_v16 = vpop.f32.mrf.mxu1  ;;  %v234_v17 = vadd.f32 %v233_v15, %v937_v23 }
  0xf5   :  { %v277_v18 = vadd.f32 %v276_v16, %v939_v24 }
  0xf6   :  { %v306_v25 = vmax.f32 %v234_v17, 0.0 }
  0xf7   :  { %v307_v27 = vmax.f32 %v277_v18, 0.0 }
  0xfb   :  { %v235_v19 = vpop.f32.mrf.mxu0 }
  0xfc   :  { %v236_v20 = vadd.f32 %v235_v19, %v937_v23  ;;  %v278_v21 = vpop.f32.mrf.mxu1 }
  0xfd   :  { %v279_v22 = vadd.f32 %v278_v21, %v939_v24 }
  0xfe   :  { %v308_v26 = vmax.f32 %v236_v20, 0.0 }
  0xff   :  { %v309_v28 = vmax.f32 %v279_v22, 0.0 }
 0x100   :  { %v324_v29 = vpack.c.bf16 %v308_v26, %v306_v25 }
 0x101   :  { %v325_v30 = vpack.c.bf16 %v309_v28, %v307_v27 }
 0x102   :  { %490 = vmatmul.bf16.gmra.mxu2 %v324_v29 }
 0x103   :  { %533 = vmatmul.bf16.gmra.mxu3 %v325_v30  ;;  %v238_v31 = vpop.f32.mrf.mxu0 }
 0x104   :  { %v281_v32 = vpop.f32.mrf.mxu1  ;;  %v239_v33 = vadd.f32 %v238_v31, %v937_v23 }
 0x105   :  { %v282_v34 = vadd.f32 %v281_v32, %v939_v24 }
 0x106   :  { %v310_v39 = vmax.f32 %v239_v33, 0.0 }
 0x107   :  { %v311_v41 = vmax.f32 %v282_v34, 0.0 }
 0x10b   :  { %v240_v35 = vpop.f32.mrf.mxu0 }
 0x10c   :  { %v241_v36 = vadd.f32 %v240_v35, %v937_v23  ;;  %v283_v37 = vpop.f32.mrf.mxu1 }
 0x10d   :  { %v284_v38 = vadd.f32 %v283_v37, %v939_v24 }
 0x10e   :  { %v312_v40 = vmax.f32 %v241_v36, 0.0 }
 0x10f   :  { %v313_v42 = vmax.f32 %v284_v38, 0.0 }
 0x110   :  { %v326_v43 = vpack.c.bf16 %v312_v40, %v310_v39 }
 0x111   :  { %v327_v44 = vpack.c.bf16 %v313_v42, %v311_v41 }
 0x112   :  { %495 = vmatmul.bf16.gmra.mxu2 %v326_v43 }
 0x113   :  { %538 = vmatmul.bf16.gmra.mxu3 %v327_v44  ;;  %v243_v45 = vpop.f32.mrf.mxu0 }
 0x114   :  { %v286_v46 = vpop.f32.mrf.mxu1  ;;  %v244_v47 = vadd.f32 %v243_v45, %v937_v23 }
 0x115   :  { %v287_v48 = vadd.f32 %v286_v46, %v939_v24 }
 0x116   :  { %v314_v49 = vmax.f32 %v244_v47, 0.0 }
 0x117   :  { %v315_v50 = vmax.f32 %v287_v48, 0.0 }
 0x118   :  { %v328_v53 = vpack.c.bf16 %v314_v49, %v314_v49 }
 0x119   :  { %v329_v54 = vpack.c.bf16 %v315_v50, %v315_v50 }
 0x11b   :  { %v245_v51 = vpop.f32.mrf.mxu0 }
 0x11c   :  { %v288_v52 = vpop.f32.mrf.mxu1 }
 0x122   :  { %500 = vmatmul.bf16.gmra.mxu2 %v328_v53 }
 0x123   :  { %543 = vmatmul.bf16.gmra.mxu3 %v329_v54 }
 0x145   :  { %v471_v56 = vpop.f32.mrf.mxu2 }
 0x146   :  { %v472_v57 = vadd.f32 %v970_v55, %v471_v56  ;;  %v514_v58 = vpop.f32.mrf.mxu3 }
 0x148   :  { %v515_v23 = vadd.f32 %v514_v58, %v472_v57 }
 0x14a   :  { %548 = vst [vmem:[#allocation10] sm:$0xff] %v515_v23 }
 0x14d   :  { %v473_v24 = vpop.f32.mrf.mxu2 }
 0x14e   :  { %v474_v59 = vadd.f32 %v970_v55, %v473_v24  ;;  %v516_v60 = vpop.f32.mrf.mxu3 }
 0x150   :  { %v517_v61 = vadd.f32 %v516_v60, %v474_v59 }
 0x152   :  { %549 = vst [vmem:[#allocation10 + $0x8] sm:$0xff] %v517_v61 }
 0x155   :  { %v476_v62 = vpop.f32.mrf.mxu2 }
 0x156   :  { %v477_v63 = vadd.f32 %v970_v55, %v476_v62  ;;  %v519_v0 = vpop.f32.mrf.mxu3 }
 0x158   :  { %v520_v1 = vadd.f32 %v519_v0, %v477_v63 }
 0x15a   :  { %550 = vst [vmem:[#allocation10 + $0x10] sm:$0xff] %v520_v1 }
 0x15d   :  { %v478_v2 = vpop.f32.mrf.mxu2 }
 0x15e   :  { %v479_v3 = vadd.f32 %v970_v55, %v478_v2  ;;  %v521_v4 = vpop.f32.mrf.mxu3 }
 0x160   :  { %v522_v5 = vadd.f32 %v521_v4, %v479_v3 }
 0x162   :  { %551 = vst [vmem:[#allocation10 + $0x18] sm:$0xff] %v522_v5 }
 0x165   :  { %v481_v6 = vpop.f32.mrf.mxu2 }
 0x166   :  { %v482_v7 = vadd.f32 %v970_v55, %v481_v6  ;;  %v524_v8 = vpop.f32.mrf.mxu3 }
 0x168   :  { %v525_v9 = vadd.f32 %v524_v8, %v482_v7 }
 0x16a   :  { %552 = vst [vmem:[#allocation10 + $0x20] sm:$0xff] %v525_v9 }
 0x16d   :  { %v483_v10 = vpop.f32.mrf.mxu2 }
 0x16e   :  { %v484_v11 = vadd.f32 %v970_v55, %v483_v10  ;;  %v526_v12 = vpop.f32.mrf.mxu3 }
 0x170   :  { %v527_v13 = vadd.f32 %v526_v12, %v484_v11 }
 0x172   :  { %553 = vst [vmem:[#allocation10 + $0x28] sm:$0xff] %v527_v13 }
 0x175   :  { %v486_v14 = vpop.f32.mrf.mxu2 }
 0x176   :  { %v487_v15 = vadd.f32 %v970_v55, %v486_v14  ;;  %v529_v16 = vpop.f32.mrf.mxu3 }
 0x178   :  { %v530_v17 = vadd.f32 %v529_v16, %v487_v15 }
 0x17a   :  { %554 = vst [vmem:[#allocation10 + $0x30] sm:$0xff] %v530_v17 }
 0x17d   :  { %v488_v18 = vpop.f32.mrf.mxu2 }
 0x17e   :  { %v489_v19 = vadd.f32 %v970_v55, %v488_v18  ;;  %v531_v20 = vpop.f32.mrf.mxu3 }
 0x180   :  { %v532_v21 = vadd.f32 %v531_v20, %v489_v19 }
 0x182   :  { %555 = vst [vmem:[#allocation10 + $0x38] sm:$0xff] %v532_v21 }
 0x185   :  { %v491_v22 = vpop.f32.mrf.mxu2 }
 0x186   :  { %v492_v25 = vadd.f32 %v970_v55, %v491_v22  ;;  %v534_v26 = vpop.f32.mrf.mxu3 }
 0x188   :  { %v535_v27 = vadd.f32 %v534_v26, %v492_v25 }
 0x18a   :  { %556 = vst [vmem:[#allocation10 + $0x40] sm:$0xff] %v535_v27 }
 0x18d   :  { %v493_v28 = vpop.f32.mrf.mxu2 }
 0x18e   :  { %v494_v29 = vadd.f32 %v970_v55, %v493_v28  ;;  %v536_v30 = vpop.f32.mrf.mxu3 }
 0x190   :  { %v537_v31 = vadd.f32 %v536_v30, %v494_v29 }
 0x192   :  { %557 = vst [vmem:[#allocation10 + $0x48] sm:$0xff] %v537_v31 }
 0x195   :  { %v496_v32 = vpop.f32.mrf.mxu2 }
 0x196   :  { %v497_v33 = vadd.f32 %v970_v55, %v496_v32  ;;  %v539_v34 = vpop.f32.mrf.mxu3 }
 0x198   :  { %v540_v35 = vadd.f32 %v539_v34, %v497_v33 }
 0x19a   :  { %558 = vst [vmem:[#allocation10 + $0x50] sm:$0xff] %v540_v35 }
 0x19d   :  { %v498_v36 = vpop.f32.mrf.mxu2 }
 0x19e   :  { %v499_v37 = vadd.f32 %v970_v55, %v498_v36  ;;  %v541_v38 = vpop.f32.mrf.mxu3 }
 0x1a0   :  { %v542_v39 = vadd.f32 %v541_v38, %v499_v37 }
 0x1a2   :  { %559 = vst [vmem:[#allocation10 + $0x58] sm:$0xff] %v542_v39 }
 0x1a5   :  { %v501_v40 = vpop.f32.mrf.mxu2 }
 0x1a6   :  { %v502_v41 = vadd.f32 %v970_v55, %v501_v40  ;;  %v544_v42 = vpop.f32.mrf.mxu3 }
 0x1a8   :  { %v545_v43 = vadd.f32 %v544_v42, %v502_v41 }
 0x1aa   :  { %560 = vst [vmem:[#allocation10 + $0x60] sm:$0xff] %v545_v43 }
 0x1ab   :  { %573 = dma.vmem_to_hbm [thread:$0]  %s566_s15, 1664, %s568_s18, [#allocation4], %s881_s26, %s881_s26, %s882_s27  }
 0x1ad   :  { %v503_v44 = vpop.f32.mrf.mxu2 }
 0x1ae   :  { %v546_v45 = vpop.f32.mrf.mxu3 }
 0x1af   :  { %878 = dma.done.wait [#allocation4], 1664  }
 0x1b0   :  { %879 = vsyncadd [#allocation4], 4294965632 }
 0x1b1   :  { %578 = vsyncpa [#allocation3], 1 }
 0x1b2   :  { %579 = vsyncpa [#allocation6], 1 }
 0x1b3   :  { %580 = vsyncpa [#allocation9], 1 }
 0x1b4   :  { %581 = vsyncpa [#allocation4], 1 }

</bundles_post_ra>
